<compile_context>
chip_gen: v6e
topology: v6e:2x2x1
jax: 0.10.0
libtpu: 0.0.40
codegen_flags: <defaults>
</compile_context>

<pallas_src>
import functools

import jax
import jax.numpy as jnp
from jax.experimental import pallas as pl
from jax.experimental.pallas import tpu as pltpu

NEG_SLOPE = 0.2        # GATv2Conv default negative_slope
NEG_INF = -1e30        # finite "-inf" sentinel for the online softmax running max


def _round_up(n, m):
    return ((n + m - 1) // m) * m


def _pick_tile(n_pad, candidates):
    return next(t for t in candidates if n_pad % t == 0)


def _pick_tiles(n_pad):
    """Pick (target, source) node tiles; both multiples of 128 dividing n_pad."""
    # Keep >= 2 i-tiles whenever possible so the "parallel" axis feeds both
    # TensorCores on v7x.
    tile_i = 256 if (n_pad % 256 == 0 and n_pad // 256 >= 2) else 128
    tj_cands = (512, 256, 128)
    try:  # cap the source tile on v7x (64 MiB VMEM); v5e/v6e have 128 MiB.
        vmem = getattr(pltpu.get_tpu_info(), "vmem_capacity_bytes", 0)
        if vmem and vmem <= 80 * 1024 * 1024:
            tj_cands = (256, 128)
    except Exception:
        pass
    return tile_i, _pick_tile(n_pad, tj_cands)


# ---------------------------------------------------------------------------
# Kernel 1: fused lin_l / lin_r projection (channel-major layout).
#   [Wl^T | Wr^T] (bf16) @ x^T (bf16)  + b   ->   x_l^T, x_r^T   (f32, [C, N])
# ---------------------------------------------------------------------------
def proj_kernel(x_ref, w_ref, b_ref, xl_ref, xr_ref):
    c = xl_ref.shape[0]
    x_bf = x_ref[...].astype(jnp.bfloat16)                 # true K, bf16 MXU operand
    h = jnp.dot(w_ref[...], x_bf, preferred_element_type=jnp.float32)
    h = h + b_ref[...]
    xl_ref[...] = h[:c, :]                                 # lin_l(x): source/message
    xr_ref[...] = h[c:, :]                                 # lin_r(x): target


def project(x_t, w_cat, b_cat, *, cpad):
    fpad, n_pad = x_t.shape
    tile_n = _pick_tile(n_pad, (512, 256, 128))
    return pl.pallas_call(
        proj_kernel,
        out_shape=(jax.ShapeDtypeStruct((cpad, n_pad), jnp.float32),
                   jax.ShapeDtypeStruct((cpad, n_pad), jnp.float32)),
        grid_spec=pltpu.PrefetchScalarGridSpec(
            num_scalar_prefetch=0,
            grid=(n_pad // tile_n,),
            in_specs=[
                pl.BlockSpec((fpad, tile_n), lambda i: (0, i)),      # x^T tile
                pl.BlockSpec((2 * cpad, fpad), lambda i: (0, 0)),    # [Wl^T|Wr^T] bf16
                pl.BlockSpec((2 * cpad, 1), lambda i: (0, 0)),       # bias
            ],
            out_specs=[
                pl.BlockSpec((cpad, tile_n), lambda i: (0, i)),
                pl.BlockSpec((cpad, tile_n), lambda i: (0, i)),
            ],
        ),
        compiler_params=pltpu.CompilerParams(
            dimension_semantics=("parallel",)),
    )(x_t, w_cat, b_cat)


# ---------------------------------------------------------------------------
# Kernel 2: GATv2 attention + aggregation (flash-style online softmax).
#   grid = (target tiles i ["parallel"], source tiles j ["arbitrary"])
# ---------------------------------------------------------------------------
def gat_attn_kernel(xr_ref, xl_ref, we_ref, att_ref, bias_ref, g_ref,
                    out_ref, s_s, m_s, l_s, acc_s, *, apply_relu):
    j_blk = pl.program_id(1)
    edge_dim = we_ref.shape[1]
    tile_j, tile_i = s_s.shape

    @pl.when(j_blk == 0)
    def _init():
        m_s[...] = jnp.full_like(m_s, NEG_INF)
        l_s[...] = jnp.zeros_like(l_s)
        acc_s[...] = jnp.zeros_like(acc_s)

    xr = xr_ref[...]                        # [C, TI]  lin_r(x) of targets
    xl = xl_ref[...]                        # [C, TJ]  lin_l(x) of sources
    we = we_ref[...]                        # [C, De]
    att = att_ref[...]                      # [C, 1]
    lane_ids = jax.lax.broadcasted_iota(jnp.int32, (1, tile_j), 1)

    # --- raw GATv2 logits, one source row at a time ------------------------
    # working set per row is [C, TI] (a few vregs); channels on sublanes,
    # targets on lanes; channel reduce is a sublane reduce.
    def row_body(j, running_max):
        # x_l column of source j as [C, 1] via a masked lane reduce.
        # TODO(synk): a dynamic lane slice/rotate would be cheaper if it is
        #             guaranteed to lower on every target generation.
        xl_col = jnp.sum(jnp.where(lane_ids == j, xl, 0.0), axis=1, keepdims=True)
        v = xr + xl_col                                            # [C, TI]
        for d in range(edge_dim):                                  # tiny De: VPU FMAs
            e_row = g_ref[1 + d, pl.ds(j, 1), :].astype(jnp.float32)   # [1, TI]
            v = v + we[:, d:d + 1] * e_row
        v = jnp.maximum(v, NEG_SLOPE * v)                          # leaky relu
        s_row = jnp.sum(v * att, axis=0, keepdims=True)            # [1, TI] sublane sum
        s_s[pl.ds(j, 1), :] = s_row
        return jnp.maximum(running_max, s_row)

    block_max = jax.lax.fori_loop(
        0, tile_j, row_body,
        jnp.full((1, tile_i), NEG_INF, jnp.float32), unroll=8)

    # --- online softmax update over this source block ----------------------
    m_new = jnp.maximum(m_s[...], block_max)                       # [1, TI]
    corr = jnp.exp(m_s[...] - m_new)
    adj = g_ref[0, :, :].astype(jnp.float32)                       # [TJ, TI] 0/1 mask
    p_t = jnp.exp(s_s[...] - m_new) * adj                          # masked, unnormalized
    l_s[...] = corr * l_s[...] + jnp.sum(p_t, axis=0, keepdims=True)
    acc_s[...] = corr * acc_s[...] + jnp.dot(
        xl.astype(jnp.bfloat16), p_t.astype(jnp.bfloat16),         # bf16 MXU, f32 accum
        preferred_element_type=jnp.float32)
    m_s[...] = m_new

    @pl.when(j_blk == pl.num_programs(1) - 1)
    def _finalize():
        out = acc_s[...] / l_s[...] + bias_ref[...]                # exact divide
        if apply_relu:
            out = jnp.maximum(out, 0.0)
        out_ref[...] = out.astype(out_ref.dtype)


def gatv2_layer(x_t, params, g, *, apply_relu):
    cpad = params["att"].shape[0]
    de = params["we"].shape[1]
    n_pad = x_t.shape[1]

    xl_t, xr_t = project(x_t, params["w_cat"], params["b_cat"], cpad=cpad)

    tile_i, tile_j = _pick_tiles(n_pad)
    kernel = functools.partial(gat_attn_kernel, apply_relu=apply_relu)
    return pl.pallas_call(
        kernel,
        out_shape=jax.ShapeDtypeStruct((cpad, n_pad), jnp.float32),
        grid_spec=pltpu.PrefetchScalarGridSpec(
            num_scalar_prefetch=0,
            grid=(n_pad // tile_i, n_pad // tile_j),
            in_specs=[
                pl.BlockSpec((cpad, tile_i), lambda i, j: (0, i)),            # x_r^T
                pl.BlockSpec((cpad, tile_j), lambda i, j: (0, j)),            # x_l^T
                pl.BlockSpec((cpad, de), lambda i, j: (0, 0)),                # W_e^T
                pl.BlockSpec((cpad, 1), lambda i, j: (0, 0)),                 # att
                pl.BlockSpec((cpad, 1), lambda i, j: (0, 0)),                 # out bias
                pl.BlockSpec((de + 1, tile_j, tile_i),
                             lambda i, j: (0, j, i)),                         # [adj|eattr]
            ],
            out_specs=pl.BlockSpec((cpad, tile_i), lambda i, j: (0, i)),
            scratch_shapes=[
                pltpu.VMEM((tile_j, tile_i), jnp.float32),    # raw scores s^T
                pltpu.VMEM((1, tile_i), jnp.float32),         # running max   m
                pltpu.VMEM((1, tile_i), jnp.float32),         # running denom l
                pltpu.VMEM((cpad, tile_i), jnp.float32),      # running numerator
            ],
        ),
        compiler_params=pltpu.CompilerParams(
            dimension_semantics=("parallel", "arbitrary"),
            vmem_limit_bytes=48 * 1024 * 1024),
    )(xr_t, xl_t, params["we"], params["att"], params["bias"], g)


# ---------------------------------------------------------------------------
# Glue: sparse edge list -> padded dense plane stack (+ self loops, 'mean').
# ---------------------------------------------------------------------------
def build_graph_planes(edge_index, edge_attr, n_pad):
    """[1+De, N, N] bf16 in (plane, src, dst) order; plane 0 = adjacency."""
    src, dst = edge_index[0], edge_index[1]
    de = edge_attr.shape[1]
    keep = (src != dst).astype(jnp.float32)          # PyG removes existing self loops
    adj = jnp.zeros((n_pad, n_pad), jnp.float32).at[src, dst].max(keep)
    ed = jnp.zeros((n_pad, n_pad, de), jnp.float32).at[src, dst].add(
        edge_attr * keep[:, None])

    # add_self_loops(fill_value='mean'): loop attr = mean of incoming edge attrs.
    sums = jnp.zeros((n_pad, de), jnp.float32).at[dst].add(edge_attr * keep[:, None])
    cnt = jnp.zeros((n_pad,), jnp.float32).at[dst].add(keep)
    loop_attr = sums / jnp.maximum(cnt, 1.0)[:, None]

    diag = jnp.arange(n_pad)
    adj = adj.at[diag, diag].set(1.0)                # padded rows get a loop too
    ed = ed.at[diag, diag].set(loop_attr)            # (keeps softmax denom > 0)
    planes = jnp.concatenate([adj[None], jnp.transpose(ed, (2, 0, 1))], axis=0)
    return planes.astype(jnp.bfloat16)               # single O(N^2) bf16 HBM stream


# ---------------------------------------------------------------------------
# Deterministic parameter init (glorot weights, zero biases); channel padding
# only to a sublane multiple of 8 (no 128-lane padding).
# ---------------------------------------------------------------------------
def glorot(key, fan_in, fan_out):
    limit = (6.0 / (fan_in + fan_out)) ** 0.5
    return jax.random.uniform(key, (fan_in, fan_out), jnp.float32, -limit, limit)


def init_gatv2_params(key, in_ch, edge_dim, out_ch):
    k = jax.random.split(key, 4)
    fpad = _round_up(in_ch, 8)
    cpad = _round_up(out_ch, 8)
    wl = glorot(k[0], in_ch, out_ch)
    wr = glorot(k[1], in_ch, out_ch)
    we = glorot(k[2], edge_dim, out_ch)
    att = glorot(k[3], 1, out_ch)
    w_cat = (jnp.zeros((2 * cpad, fpad), jnp.float32)
             .at[:out_ch, :in_ch].set(wl.T)
             .at[cpad:cpad + out_ch, :in_ch].set(wr.T))
    return {
        "w_cat": w_cat.astype(jnp.bfloat16),                       # [2Cp, Fp] bf16 MXU
        "b_cat": jnp.zeros((2 * cpad, 1), jnp.float32),            # lin_l/lin_r bias
        "we": jnp.zeros((cpad, edge_dim), jnp.float32).at[:out_ch, :].set(we.T),
        "att": jnp.zeros((cpad, 1), jnp.float32).at[:out_ch, 0].set(att[0]),
        "bias": jnp.zeros((cpad, 1), jnp.float32),                 # output bias
        # unpadded float32 copies for the pure-JAX reference
        "_wl": wl, "_wr": wr, "_we": we, "_att": att,
    }


def gnn_encoder_forward(x, edge_index, edge_attr, params1, params2):
    n, f = x.shape
    out_ch = params2["_att"].shape[1]
    n_pad = _round_up(max(n, 128), 128)

    g = build_graph_planes(edge_index, edge_attr, n_pad)

    fpad = params1["w_cat"].shape[1]
    x_t = jnp.zeros((fpad, n_pad), jnp.float32).at[:f, :n].set(x.T)

    # hidden state stays channel-major [C, N] between the two layers
    h_t = gatv2_layer(x_t, params1, g, apply_relu=True)
    out_t = gatv2_layer(h_t, params2, g, apply_relu=False)
    return out_t[:out_ch, :n].T


# ---------------------------------------------------------------------------
# Pure-JAX dense reference (mimics the kernels' bf16 MXU-operand rounding).
# ---------------------------------------------------------------------------
def _q(a):
    return a.astype(jnp.bfloat16).astype(jnp.float32)


def gatv2_ref(x, p, adj, ed, apply_relu):
    hp = jax.lax.Precision.HIGHEST
    xl = jnp.dot(_q(x), _q(p["_wl"]), precision=hp)
    xr = jnp.dot(_q(x), _q(p["_wr"]), precision=hp)
    eproj = jnp.einsum("ijd,dc->ijc", ed, p["_we"], precision=hp)
    v = xr[:, None, :] + xl[None, :, :] + eproj
    v = jnp.where(v > 0, v, NEG_SLOPE * v)
    s = jnp.sum(v * p["_att"][None, :, :], axis=-1)      # raw logits (non-edges too)
    m = s.max(-1, keepdims=True)
    pexp = jnp.exp(s - m) * (adj > 0)
    denom = pexp.sum(-1, keepdims=True)
    out = jnp.dot(_q(pexp), _q(xl), precision=hp) / denom
    return jnp.maximum(out, 0.0) if apply_relu else out


if __name__ == "__main__":
    key = jax.random.PRNGKey(0)
    k_x, k_e, k_p1, k_p2 = jax.random.split(key, 4)

    num_nodes = 8
    in_channels = 4
    edge_dim = 4
    hidden_channels = 32
    out_channels = 16

    # Deterministic graph: edges (i+1)%N -> i and (i+2)%N -> i for every node i.
    dst = jnp.concatenate([jnp.arange(num_nodes), jnp.arange(num_nodes)])
    src = jnp.concatenate([(jnp.arange(num_nodes) + 1) % num_nodes,
                           (jnp.arange(num_nodes) + 2) % num_nodes])
    edge_index = jnp.stack([src, dst]).astype(jnp.int32)              # [2, 16]
    edge_attr = jax.random.normal(k_e, (edge_index.shape[1], edge_dim), jnp.float32)
    x = jax.random.normal(k_x, (num_nodes, in_channels), jnp.float32)

    params1 = init_gatv2_params(k_p1, in_channels, edge_dim, hidden_channels)
    params2 = init_gatv2_params(k_p2, hidden_channels, edge_dim, out_channels)

    out = gnn_encoder_forward(x, edge_index, edge_attr, params1, params2)
    out = jax.block_until_ready(out)
    assert out.shape == (num_nodes, out_channels)

    # Reference over the same padded node set / bf16-quantized dense graph.
    n_pad = _round_up(max(num_nodes, 128), 128)
    planes = build_graph_planes(edge_index, edge_attr, n_pad).astype(jnp.float32)
    adj_ref = planes[0].T                                  # [dst, src]
    ed_ref = jnp.transpose(planes[1:], (2, 1, 0))          # [dst, src, De]
    x_pad = jnp.zeros((n_pad, in_channels), jnp.float32).at[:num_nodes].set(x)
    h_ref = gatv2_ref(x_pad, params1, adj_ref, ed_ref, True)
    ref = gatv2_ref(h_ref, params2, adj_ref, ed_ref, False)[:num_nodes]

    err = float(jnp.max(jnp.abs(out - ref)))
    assert jnp.allclose(out, ref, atol=1e-2, rtol=1e-2), err

    print("KERNEL_OK")
</pallas_src>

<mosaic_0001>
module attributes {stable_mosaic.version = 11 : i64} {
  func.func @proj_kernel(%arg0: i32, %arg1: memref<8x128xf32, #tpu.memory_space<vmem>>, %arg2: memref<64x8xbf16, #tpu.memory_space<vmem>>, %arg3: memref<64x1xf32, #tpu.memory_space<vmem>>, %arg4: memref<32x128xf32, #tpu.memory_space<vmem>>, %arg5: memref<32x128xf32, #tpu.memory_space<vmem>>) attributes {dimension_semantics = [#tpu.dimension_semantics<parallel>], iteration_bounds = array<i64: 1>, scalar_prefetch = 0 : i64, scratch_operands = 0 : i64, tpu.core_type = #tpu.core_type<tc>, window_params = [{transform_indices = @transform_0, window_bounds = array<i64: 8, 128>}, {pipeline_mode = #tpu.pipeline_mode<synchronous>, transform_indices = @transform_1, window_bounds = array<i64: 64, 8>}, {pipeline_mode = #tpu.pipeline_mode<synchronous>, transform_indices = @transform_2, window_bounds = array<i64: 64, 1>}, {transform_indices = @transform_3, window_bounds = array<i64: 32, 128>}, {transform_indices = @transform_4, window_bounds = array<i64: 32, 128>}]} {
    %c0 = arith.constant 0 : index
    %c0_0 = arith.constant 0 : index
    %0 = vector.load %arg1[%c0, %c0_0] : memref<8x128xf32, #tpu.memory_space<vmem>>, vector<8x128xf32>
    %1 = arith.truncf %0 : vector<8x128xf32> to vector<8x128xbf16>
    %c0_1 = arith.constant 0 : index
    %c0_2 = arith.constant 0 : index
    %2 = vector.load %arg2[%c0_1, %c0_2] : memref<64x8xbf16, #tpu.memory_space<vmem>>, vector<64x8xbf16>
    %cst = arith.constant dense<0.000000e+00> : vector<64x128xf32>
    %3 = tpu.matmul %2, %1, %cst {dimension_numbers = #tpu.dot_dimension_numbers<[1], [0], [0], [1], [0, 0, 1, 1], [], []>} : vector<64x8xbf16>, vector<8x128xbf16>, vector<64x128xf32> -> vector<64x128xf32>
    %c0_3 = arith.constant 0 : index
    %c0_4 = arith.constant 0 : index
    %4 = vector.load %arg3[%c0_3, %c0_4] : memref<64x1xf32, #tpu.memory_space<vmem>>, vector<64x1xf32>
    %5 = vector.broadcast %4 : vector<64x1xf32> to vector<64x128xf32>
    %6 = arith.addf %3, %5 : vector<64x128xf32>
    %7 = vector.extract_strided_slice %6 {offsets = [0, 0], sizes = [32, 128], strides = [1, 1]} : vector<64x128xf32> to vector<32x128xf32>
    %c0_5 = arith.constant 0 : index
    %c0_6 = arith.constant 0 : index
    %8 = vector.load %arg4[%c0_5, %c0_6] : memref<32x128xf32, #tpu.memory_space<vmem>>, vector<32x128xf32>
    tpu.vector_store %arg4[%c0_5, %c0_6], %7 {strides = array<i32>} : memref<32x128xf32, #tpu.memory_space<vmem>>, vector<32x128xf32>,
    %9 = vector.extract_strided_slice %6 {offsets = [32, 0], sizes = [32, 128], strides = [1, 1]} : vector<64x128xf32> to vector<32x128xf32>
    %c0_7 = arith.constant 0 : index
    %c0_8 = arith.constant 0 : index
    %10 = vector.load %arg5[%c0_7, %c0_8] : memref<32x128xf32, #tpu.memory_space<vmem>>, vector<32x128xf32>
    tpu.vector_store %arg5[%c0_7, %c0_8], %9 {strides = array<i32>} : memref<32x128xf32, #tpu.memory_space<vmem>>, vector<32x128xf32>,
    return
  }
  func.func @transform_0(%arg0: i32) -> (i32, i32) {
    %c0_i32 = arith.constant 0 : i32
    %c0_i32_0 = arith.constant 0 : i32
    return %c0_i32, %arg0 : i32, i32
  }
  func.func @transform_1(%arg0: i32) -> (i32, i32) {
    %c0_i32 = arith.constant 0 : i32
    %c0_i32_0 = arith.constant 0 : i32
    %c0_i32_1 = arith.constant 0 : i32
    return %c0_i32, %c0_i32_0 : i32, i32
  }
  func.func @transform_2(%arg0: i32) -> (i32, i32) {
    %c0_i32 = arith.constant 0 : i32
    %c0_i32_0 = arith.constant 0 : i32
    %c0_i32_1 = arith.constant 0 : i32
    return %c0_i32, %c0_i32_0 : i32, i32
  }
  func.func @transform_3(%arg0: i32) -> (i32, i32) {
    %c0_i32 = arith.constant 0 : i32
    %c0_i32_0 = arith.constant 0 : i32
    return %c0_i32, %arg0 : i32, i32
  }
  func.func @transform_4(%arg0: i32) -> (i32, i32) {
    %c0_i32 = arith.constant 0 : i32
    %c0_i32_0 = arith.constant 0 : i32
    return %c0_i32, %arg0 : i32, i32
  }
}

</mosaic_0001>

<bundles_post_ra>
// kernel: tpu_custom_call.1
= control target key start
LH: loop header
LB: loop body
LE: loop exit
PB: predicated region body
PF: predicated region fallthrough
CT: control target
= control target key end

     0   :  { %10 = vsyncpa [#allocation3], 0  ;;  %vm110_vm0 = vcmask 1043456   ;;  %vm97_vm1 = vcmask 64512   ;;  %v301_v9 = vmov 0   ;;  %s380_s0 = inlined_call_operand.vmem [shape: f32[8,128], index: 0, kind: input, shape index: {}]   ;;  %s381_s1 = inlined_call_operand.vmem [shape: bf16[64,8], index: 1, kind: input, shape index: {}]   ;;  %s382_s2 = inlined_call_operand.vmem [shape: f32[64,1], index: 2, kind: input, shape index: {}]   ;;  %s383_s3 = inlined_call_operand.hbm [shape: f32[32,128], index: 3, kind: output, shape index: {0}]   ;;  %s384_s4 = inlined_call_operand.hbm [shape: f32[32,128], index: 4, kind: output, shape index: {1}]  }
   0x1   :  { %v19_v0 = vld [vmem:[%s380_s0] sm:$0xff]  ;;  %v254_v3 = vld [vmem:[%s381_s1 + $0x10] sm:$0xff]   ;;  %v255_v5 = vld [vmem:[%s381_s1 + $0x8] sm:$0xff]   ;;  %252 = vset.pattern.permute.xlu1 %v301_v9  ;;  %251 = vset.pattern.permute.xlu0 %v301_v9 }
   0x2   :  { %v20_v1 = vpack.c.bf16 %v19_v0, %v19_v0  ;;  %v253_v2 = vld [vmem:[%s381_s1] sm:$0xff]   ;;  %v256_v6 = vld [vmem:[%s381_s1 + $0x18] sm:$0xff]   ;;  %238 = vmatprep.mubr.msk.bf16.mxu1 %vm97_vm1, %v254_v3  ;;  %v31_v7 = vld [vmem:[%s382_s2 + $0x10] sm:$0xff] }
   0x3   :  { %234 = vmatprep.mubr.msk.bf16.mxu0 %vm97_vm1, %v253_v2  ;;  %v29_v8 = vld [vmem:[%s382_s2] sm:$0xff] }
   0x4   :  { %244 = vmatprep.subr.msk.bf16.mxu0 %vm110_vm0, %v20_v1  ;;  %245 = vmatprep.subr.msk.bf16.mxu1 %vm110_vm0, %v20_v1  ;;  %v112_v4 = vsel %vm110_vm0, %v20_v1, 0 }
   0x5   :  { %233 = vmatpush3.bf16.msra.mxu0 %v112_v4  ;;  %243 = vmatpush3.bf16.msra.mxu1 %v112_v4 }
   0x8   :  { %235 = vmatmul.mubr.msk.bf16.vlgmr.msra.gmra.mxu0 %vm97_vm1, %v255_v5  ;;  %239 = vmatmul.mubr.msk.bf16.vlgmr.msra.gmra.mxu1 %vm97_vm1, %v256_v6 }
   0x9   :  { %11 = vsyncpa [#allocation5], 0  ;;  %49 = vperm.xlu1 %252, %v31_v7   ;;  %39 = vperm.xlu0 %251, %v29_v8   ;;  %v32_v10 = vld [vmem:[%s382_s2 + $0x18] sm:$0xff]  ;;  %v30_v11 = vld [vmem:[%s382_s2 + $0x8] sm:$0xff]  ;;  %s303_s14 = smov [#allocation4]  }
   0xa   :  { %v34_v12 = vld [vmem:[%s382_s2 + $0x28] sm:$0xff]  ;;  %v33_v13 = vld [vmem:[%s382_s2 + $0x20] sm:$0xff]  ;;  %v36_v14 = vld [vmem:[%s382_s2 + $0x38] sm:$0xff]  ;;  %s204_s15 = sshll.u32 %s303_s14, 4  ;;  %s205_s15 = int_to_ptr.vmem [resolvable:$true] %s204_s15 }
   0xb   :  { %v35_v15 = vld [vmem:[%s382_s2 + $0x30] sm:$0xff]  ;;  %s302_s2 = smov [#allocation2]  }
   0xc   :  { %s192_s13 = sshll.u32 %s302_s2, 4  ;;  %s193_s13 = int_to_ptr.vmem [resolvable:$true] %s192_s13 }
   0xd   :  { %54 = vperm.xlu1 %252, %v32_v10   ;;  %44 = vperm.xlu0 %251, %v30_v11   ;;  %s257_s16 = scalar_lea.vmem %s193_s13, 512  ;;  %p262_p1 = scmp.lt.s32.totalorder %s193_s13, %s193_s13 }
   0xe   :  { %p258_p0 = scmp.ne.s32.totalorder %s193_s13, %s257_s16  ;;  %p263_p2 = scmp.lt.s32.totalorder %s257_s16, %s257_s16 }
  0x10   :  { %p264_p3 = por %p263_p2, %p262_p1 }
  0x11   :  { %64 = vperm.xlu1 %252, %v34_v12   ;;  %59 = vperm.xlu0 %251, %v33_v13  }
  0x12   :  { %p265_p4 = pnand %p264_p3, %p258_p0 }
  0x15   :  { %74 = vperm.xlu1 %252, %v36_v14   ;;  %69 = vperm.xlu0 %251, %v35_v15  }
  0x84   :  { %v40_v16 = vpop.permute.xlu0 %39  ;;  %v50_v17 = vpop.permute.xlu1 %49 }
  0x88   :  { %v45_v18 = vpop.permute.xlu0 %44  ;;  %v55_v19 = vpop.permute.xlu1 %54 }
  0x8c   :  { %v60_v20 = vpop.permute.xlu0 %59  ;;  %v65_v21 = vpop.permute.xlu1 %64 }
  0x90   :  { %v70_v22 = vpop.permute.xlu0 %69  ;;  %v75_v29 = vpop.permute.xlu1 %74 }
  0xc8   :  { %v236_v23 = vpop.f32.mrf.mxu0  ;;  %v240_v24 = vpop.f32.mrf.mxu1 }
  0xc9   :  { %v157_v25 = vadd.f32 %v236_v23, %v50_v17  ;;  %v173_v26 = vadd.f32 %v240_v24, %v70_v22 }
  0xca   :  { %v148_v27 = vpop.f32.mrf.mxu0  ;;  %v164_v28 = vpop.f32.mrf.mxu1 }
  0xcb   :  { %181 = vst [vmem:[#allocation2 + $0x10] sm:$0xff] %v157_v25  ;;  %185 = vst [vmem:[#allocation4 + $0x10] sm:$0xff] %v173_v26  ;;  %v149_v30 = vadd.f32 %v148_v27, %v40_v16  ;;  %v165_v31 = vadd.f32 %v164_v28, %v60_v20 }
  0xcc   :  { %v237_v32 = vpop.f32.mrf.mxu0  ;;  %v241_v33 = vpop.f32.mrf.mxu1 }
  0xcd   :  { %179 = vst [vmem:[#allocation2] sm:$0xff] %v149_v30  ;;  %183 = vst [vmem:[#allocation4] sm:$0xff] %v165_v31  ;;  %v160_v34 = vadd.f32 %v237_v32, %v55_v19  ;;  %v176_v35 = vadd.f32 %v241_v33, %v75_v29 }
  0xce   :  { %v151_v36 = vpop.f32.mrf.mxu0  ;;  %v167_v37 = vpop.f32.mrf.mxu1 }
  0xcf   :  { %182 = vst [vmem:[#allocation2 + $0x18] sm:$0xff] %v160_v34  ;;  %186 = vst [vmem:[#allocation4 + $0x18] sm:$0xff] %v176_v35  ;;  %v152_v38 = vadd.f32 %v151_v36, %v45_v18  ;;  %v168_v39 = vadd.f32 %v167_v37, %v65_v21 }
  0xd1   :  { %180 = vst [vmem:[#allocation2 + $0x8] sm:$0xff] %v152_v38  ;;  %184 = vst [vmem:[#allocation4 + $0x8] sm:$0xff] %v168_v39 }
  0xd2   :  { %268 = shalt.err (!%p265_p4)
}
  0xd3   :  { %s304_s17 = smov 128   ;;  %s305_s18 = smov 8  }
  0xd4   :  { %198 = dma.vmem_to_hbm [thread:$0]  %s193_s13, 512, %s383_s3, [#allocation3], %s304_s17, %s304_s17, %s305_s18  }
  0xd5   :  { %s277_s21 = scalar_lea.vmem %s205_s15, 512  ;;  %p282_p6 = scmp.lt.s32.totalorder %s205_s15, %s205_s15 }
  0xd6   :  { %p278_p5 = scmp.ne.s32.totalorder %s205_s15, %s277_s21  ;;  %p283_p7 = scmp.lt.s32.totalorder %s277_s21, %s277_s21 }
  0xd8   :  { %p284_p8 = por %p283_p7, %p282_p6 }
  0xda   :  { %p285_p9 = pnand %p284_p8, %p278_p5 }
  0xdc   :  { %288 = shalt.err (!%p285_p9)
}
  0xdd   :  { %210 = dma.vmem_to_hbm [thread:$0]  %s205_s15, 512, %s384_s4, [#allocation5], %s304_s17, %s304_s17, %s305_s18  }
  0xde   :  { %297 = dma.done.wait [#allocation3], 512  }
  0xdf   :  { %298 = vsyncadd [#allocation3], 4294966784 }
  0xe0   :  { %299 = dma.done.wait [#allocation5], 512  }
  0xe1   :  { %300 = vsyncadd [#allocation5], 4294966784 }
  0xe2   :  { %217 = vsyncpa [#allocation3], 1 }
  0xe3   :  { %218 = vsyncpa [#allocation5], 1 }

</bundles_post_ra>
